<compile_context>
chip_gen: v5e
topology: v5e:2x2
jax: 0.10.0
libtpu: 0.0.40
codegen_flags: <defaults>
</compile_context>

<pallas_src>
import jax
import jax.numpy as jnp
from jax.experimental import pallas as pl
from jax.experimental.pallas import tpu as pltpu


# ----------------------------------------------------------------------------- kernel

def _prompt_gen_kernel(x_ref, w1t_ref, wlint_ref, blin_ref, param_ref,
                       ryp_ref, rxbd_ref, band_ref, o_ref):
    f32 = jnp.float32
    bb, two_cin, _ = x_ref.shape
    cin = two_cin // 2
    L = param_ref.shape[0]
    H = ryp_ref.shape[0] - 2

    # (2) emb = mean over pixels of conv1(ir - vi); 1x1 conv commutes with the mean.
    x = x_ref[...].astype(f32)                                   # (bb, 2*Cin, H*W)
    means = jnp.mean(x, axis=-1)                                 # (bb, 2*Cin)
    dmean = means[:, cin:] - means[:, :cin]                      # mean(ir)-mean(vi), (bb,Cin)
    emb = jnp.dot(dmean, w1t_ref[...], preferred_element_type=f32)          # (bb, D)

    # (3) prompt_weights = softmax(linear(emb)) over prompt_len, batched over bb.
    logits = jnp.dot(emb, wlint_ref[...], preferred_element_type=f32) + blin_ref[...]
    logits = logits - jnp.max(logits, axis=-1, keepdims=True)
    e = jnp.exp(logits)
    soft = e * pl.reciprocal(jnp.sum(e, axis=-1, keepdims=True), approx=True)  # (bb, L)

    ryp = ryp_ref[...]                            # (H+2, P)        zero top/bottom rows
    rxbd = rxbd_ref[...]                          # (D*P, D*(W+2))  block-diag, zero border cols
    params = [param_ref[l] for l in range(L)]     # (P, D*P) each, resident
    band = [band_ref[dy] for dy in range(3)]      # (D*(W+2), D*W) each, resident

    for b in range(bb):                           # bb is small and static -> tiny unroll
        # (4) weighted prompt sum on the channel-column-stacked slab, shared by all
        #     channels: L scalar FMAs on lane-dense vregs.
        s_cs = soft[b:b + 1, 0:1] * params[0]
        for l in range(1, L):
            s_cs = s_cs + soft[b:b + 1, l:l + 1] * params[l]                 # (P, D*P)

        # (5) bilinear resize for ALL D channels in two MXU matmuls; zero borders in
        #     ryp/rxbd mean 'plane' is already the zero-padded 3x3-conv input.
        u = jnp.dot(ryp, s_cs, preferred_element_type=f32)                   # (H+2, D*P)
        plane = jnp.dot(u, rxbd, preferred_element_type=f32)                 # (H+2, D*(W+2))

        # (6) conv3x3 + folded adjust_channels as 3 banded matmuls (one per dy tap):
        #     out[y, o*W+x] = sum_dy plane[y+dy, :] @ band[dy][:, o*W+x].
        acc = jnp.dot(plane[0:H, :], band[0], preferred_element_type=f32)
        acc = acc + jnp.dot(plane[1:H + 1, :], band[1], preferred_element_type=f32)
        acc = acc + jnp.dot(plane[2:H + 2, :], band[2], preferred_element_type=f32)

        # (7) one wide store per image; wrapper un-stacks (H, D*W) -> (D, H, W).
        o_ref[b] = acc.astype(o_ref.dtype)


# ----------------------------------------------------------------------------- wrapper

def _interp_matrix(out_size, in_size):
    """(out_size, in_size) bilinear interpolation matrix, align_corners=True."""
    if out_size == 1:
        src = jnp.zeros((1,), jnp.float32)
    else:
        src = jnp.linspace(0.0, float(in_size - 1), out_size, dtype=jnp.float32)
    i0 = jnp.clip(jnp.floor(src), 0.0, float(in_size - 1)).astype(jnp.int32)
    i1 = jnp.minimum(i0 + 1, in_size - 1)
    frac = src - i0.astype(jnp.float32)
    rows = jnp.arange(out_size)
    R = jnp.zeros((out_size, in_size), jnp.float32)
    R = R.at[rows, i0].add(1.0 - frac)
    R = R.at[rows, i1].add(frac)
    return R


def _conv_band_matrices(keff, W):
    """Three (D*(W+2), D*W) banded matrices A_dy so that the 3x3 conv (with the 1x1
    adjust folded into keff) becomes:  out = sum_dy plane[dy:dy+H, :] @ A_dy, where
    plane is the channel-column-stacked zero-padded resized prompt."""
    D = keff.shape[0]
    Wp2 = W + 2
    ci = jnp.arange(D * Wp2) // Wp2          # input channel of padded column j
    xp = jnp.arange(D * Wp2) % Wp2           # padded x' of column j
    oi = jnp.arange(D * W) // W              # output channel of column m
    xo = jnp.arange(D * W) % W               # output x of column m
    dx = xp[:, None] - xo[None, :]           # (D*(W+2), D*W)
    valid = (dx >= 0) & (dx <= 2)
    dxc = jnp.clip(dx, 0, 2)
    mats = []
    for dy in range(3):
        k_dy = keff[:, :, dy, :]             # (D_out, D_in, 3)
        vals = k_dy[oi[None, :], ci[:, None], dxc]
        mats.append(jnp.where(valid, vals, 0.0))
    return jnp.stack(mats, axis=0).astype(jnp.float32)   # (3, D*(W+2), D*W)


def _pick_batch_block(B):
    # Amortize per-grid-step overhead, but keep >= 2 grid steps so
    # dimension_semantics=("parallel",) can still split across v7x's two TensorCores.
    for bb in (8, 4, 2):
        if B % bb == 0 and B // bb >= 2:
            return bb
    return 1


def prompt_gen_block_pallas(vi_img, ir_img, params):
    """vi_img, ir_img: (B, 3, H, W). Returns (B, prompt_dim, H, W)."""
    B, Cin, H, W = vi_img.shape
    pp = params["prompt_param"]                              # (1, L, D, P, P)
    _, L, D, P, _ = pp.shape

    # ---- static weight folds / layout plumbing (input-independent; in real deployment
    #      these would be precomputed once, here they are cheap XLA ops) ----
    w1t = params["conv1_w"].reshape(D, Cin).T                # (Cin, D)
    wlint = params["linear_w"].T                             # (D, L)
    blin = params["linear_b"].reshape(1, L)
    # prompt params, channel-column-stacked: [l, p, c*P+q] = prompt_param[0, l, c, p, q]
    param_cs = pp[0].transpose(0, 2, 1, 3).reshape(L, P, D * P)
    # zero-bordered interpolation matrices -> resized planes come out pre-padded
    ryp = jnp.pad(_interp_matrix(H, P), ((1, 1), (0, 0)))    # (H+2, P)
    rxtp = jnp.pad(_interp_matrix(W, P).T, ((0, 0), (1, 1))) # (P, W+2)
    rxbd = jnp.kron(jnp.eye(D, dtype=jnp.float32), rxtp)     # (D*P, D*(W+2)) block-diag
    # fold adjust_channels (1x1) into the 3x3 conv, then into the banded matrices
    keff = jnp.einsum("om,mcij->ocij",
                      params["adjust_w"].reshape(D, D), params["conv3x3_w"])
    band = _conv_band_matrices(keff, W)                      # (3, D*(W+2), D*W)

    # single input DMA per grid step: [vi, ir] concatenated, pixels lane-dense
    x_cat = jnp.concatenate([vi_img, ir_img], axis=1).reshape(B, 2 * Cin, H * W)

    bb = _pick_batch_block(B)
    grid = (B // bb,)

    out = pl.pallas_call(
        _prompt_gen_kernel,
        out_shape=jax.ShapeDtypeStruct((B, H, D * W), vi_img.dtype),
        grid_spec=pltpu.PrefetchScalarGridSpec(
            num_scalar_prefetch=0,
            grid=grid,
            in_specs=[
                pl.BlockSpec((bb, 2 * Cin, H * W), lambda i: (i, 0, 0)),     # images
                pl.BlockSpec((Cin, D), lambda i: (0, 0)),                    # conv1^T
                pl.BlockSpec((D, L), lambda i: (0, 0)),                      # linear^T
                pl.BlockSpec((1, L), lambda i: (0, 0)),                      # linear bias
                pl.BlockSpec((L, P, D * P), lambda i: (0, 0, 0)),            # prompts (resident)
                pl.BlockSpec((H + 2, P), lambda i: (0, 0)),                  # row-resize matrix
                pl.BlockSpec((D * P, D * (W + 2)), lambda i: (0, 0)),        # col-resize blockdiag
                pl.BlockSpec((3, D * (W + 2), D * W), lambda i: (0, 0, 0)),  # conv band matrices
            ],
            out_specs=pl.BlockSpec((bb, H, D * W), lambda i: (i, 0, 0)),
        ),
        compiler_params=pltpu.CompilerParams(
            dimension_semantics=("parallel",),
            vmem_limit_bytes=32 * 1024 * 1024,
        ),
    )(x_cat, w1t, wlint, blin, param_cs, ryp, rxbd, band)

    # layout plumbing only: (B, H, D*W) -> (B, D, H, W)
    return out.reshape(B, H, D, W).transpose(0, 2, 1, 3)


# --------------------------------------------------------------------- pure-JAX reference

def _bilinear_align_corners(x, out_h, out_w):
    """F.interpolate(x, (out_h, out_w), mode='bilinear', align_corners=True) for NCHW x."""
    B, C, Pi, Qi = x.shape
    ys = jnp.linspace(0.0, Pi - 1.0, out_h) if out_h > 1 else jnp.zeros((1,), jnp.float32)
    xs = jnp.linspace(0.0, Qi - 1.0, out_w) if out_w > 1 else jnp.zeros((1,), jnp.float32)
    y0 = jnp.clip(jnp.floor(ys), 0, Pi - 1).astype(jnp.int32)
    y1 = jnp.minimum(y0 + 1, Pi - 1)
    wy = (ys - y0.astype(jnp.float32))[None, None, :, None]
    x0 = jnp.clip(jnp.floor(xs), 0, Qi - 1).astype(jnp.int32)
    x1 = jnp.minimum(x0 + 1, Qi - 1)
    wx = (xs - x0.astype(jnp.float32))[None, None, None, :]
    g = lambda yi, xi: x[:, :, yi, :][:, :, :, xi]
    top = g(y0, x0) * (1.0 - wx) + g(y0, x1) * wx
    bot = g(y1, x0) * (1.0 - wx) + g(y1, x1) * wx
    return top * (1.0 - wy) + bot * wy


def prompt_gen_block_ref(vi_img, ir_img, params):
    B, Cin, H, W = vi_img.shape
    pp = params["prompt_param"][0]                      # (L, D, P, P)
    L, D, P, _ = pp.shape
    w1 = params["conv1_w"].reshape(D, Cin)
    wadj = params["adjust_w"].reshape(D, D)

    x = ir_img - vi_img
    x = jnp.einsum("oc,bchw->bohw", w1, x)              # conv1 (1x1, no bias)
    emb = x.mean(axis=(-2, -1))                         # (B, D)
    logits = emb @ params["linear_w"].T + params["linear_b"]
    wts = jax.nn.softmax(logits, axis=1)                # (B, L)
    prompt = jnp.einsum("bl,lchw->bchw", wts, pp)       # weighted prompt sum
    prompt = _bilinear_align_corners(prompt, H, W)      # (B, D, H, W)
    prompt = jax.lax.conv_general_dilated(
        prompt, params["conv3x3_w"], window_strides=(1, 1), padding="SAME",
        dimension_numbers=("NCHW", "OIHW", "NCHW"))
    prompt = jnp.einsum("om,bmhw->bohw", wadj, prompt)  # adjust_channels (1x1, no bias)
    return prompt


# ----------------------------------------------------------------------------- test

if __name__ == "__main__":
    k = jax.random.split(jax.random.PRNGKey(0), 8)

    B, Cin, H, W = 4, 3, 16, 16          # B=4 -> 2 images per grid step, 2 grid steps
    L, D, P = 5, 6, 32                   # prompt_len, prompt_dim, prompt_size (small)

    vi = jax.random.normal(k[0], (B, Cin, H, W), jnp.float32)
    ir = jax.random.normal(k[1], (B, Cin, H, W), jnp.float32)
    params = {
        "prompt_param": jax.random.uniform(k[2], (1, L, D, P, P), jnp.float32),
        "linear_w": 0.3 * jax.random.normal(k[3], (L, D), jnp.float32),
        "linear_b": 0.1 * jax.random.normal(k[4], (L,), jnp.float32),
        "conv1_w": 0.3 * jax.random.normal(k[5], (D, Cin, 1, 1), jnp.float32),
        "conv3x3_w": 0.2 * jax.random.normal(k[6], (D, D, 3, 3), jnp.float32),
        "adjust_w": 0.3 * jax.random.normal(k[7], (D, D, 1, 1), jnp.float32),
    }

    out = jax.jit(prompt_gen_block_pallas)(vi, ir, params)
    out = jax.block_until_ready(out)

    ref = prompt_gen_block_ref(vi, ir, params)
    assert out.shape == (B, D, H, W), out.shape
    max_err = float(jnp.max(jnp.abs(out - ref)))
    # tolerance covers the EUP approx-reciprocal used for the softmax denominator
    assert max_err < 5e-3, f"max abs error {max_err}"
    print("KERNEL_OK")
</pallas_src>

<mosaic_0001>
module attributes {stable_mosaic.version = 11 : i64} {
  func.func @_prompt_gen_kernel(%arg0: i32, %arg1: memref<2x6x256xf32, #tpu.memory_space<vmem>>, %arg2: memref<3x6xf32, #tpu.memory_space<vmem>>, %arg3: memref<6x5xf32, #tpu.memory_space<vmem>>, %arg4: memref<1x5xf32, #tpu.memory_space<vmem>>, %arg5: memref<5x32x192xf32, #tpu.memory_space<vmem>>, %arg6: memref<18x32xf32, #tpu.memory_space<vmem>>, %arg7: memref<192x108xf32, #tpu.memory_space<vmem>>, %arg8: memref<3x108x96xf32, #tpu.memory_space<vmem>>, %arg9: memref<2x16x96xf32, #tpu.memory_space<vmem>>) attributes {dimension_semantics = [#tpu.dimension_semantics<parallel>], iteration_bounds = array<i64: 2>, scalar_prefetch = 0 : i64, scratch_operands = 0 : i64, tpu.core_type = #tpu.core_type<tc>, window_params = [{transform_indices = @transform_0, window_bounds = array<i64: 2, 6, 256>}, {pipeline_mode = #tpu.pipeline_mode<synchronous>, transform_indices = @transform_1, window_bounds = array<i64: 3, 6>}, {pipeline_mode = #tpu.pipeline_mode<synchronous>, transform_indices = @transform_2, window_bounds = array<i64: 6, 5>}, {pipeline_mode = #tpu.pipeline_mode<synchronous>, transform_indices = @transform_3, window_bounds = array<i64: 1, 5>}, {pipeline_mode = #tpu.pipeline_mode<synchronous>, transform_indices = @transform_4, window_bounds = array<i64: 5, 32, 192>}, {pipeline_mode = #tpu.pipeline_mode<synchronous>, transform_indices = @transform_5, window_bounds = array<i64: 18, 32>}, {pipeline_mode = #tpu.pipeline_mode<synchronous>, transform_indices = @transform_6, window_bounds = array<i64: 192, 108>}, {pipeline_mode = #tpu.pipeline_mode<synchronous>, transform_indices = @transform_7, window_bounds = array<i64: 3, 108, 96>}, {transform_indices = @transform_8, window_bounds = array<i64: 2, 16, 96>}]} {
    %c0 = arith.constant 0 : index
    %c0_0 = arith.constant 0 : index
    %c0_1 = arith.constant 0 : index
    %0 = vector.load %arg1[%c0, %c0_0, %c0_1] : memref<2x6x256xf32, #tpu.memory_space<vmem>>, vector<2x6x256xf32>
    %cst = arith.constant dense<0.000000e+00> : vector<2x6xf32>
    %1 = vector.multi_reduction <add>, %0, %cst [2] : vector<2x6x256xf32> to vector<2x6xf32>
    %cst_2 = arith.constant 2.560000e+02 : f32
    %2 = vector.broadcast %cst_2 : f32 to vector<2x6xf32>
    %3 = arith.divf %1, %2 : vector<2x6xf32>
    %4 = vector.extract_strided_slice %3 {offsets = [0, 3], sizes = [2, 3], strides = [1, 1]} : vector<2x6xf32> to vector<2x3xf32>
    %5 = vector.extract_strided_slice %3 {offsets = [0, 0], sizes = [2, 3], strides = [1, 1]} : vector<2x6xf32> to vector<2x3xf32>
    %6 = arith.subf %4, %5 : vector<2x3xf32>
    %c0_3 = arith.constant 0 : index
    %c0_4 = arith.constant 0 : index
    %7 = vector.load %arg2[%c0_3, %c0_4] : memref<3x6xf32, #tpu.memory_space<vmem>>, vector<3x6xf32>
    %cst_5 = arith.constant dense<0.000000e+00> : vector<2x6xf32>
    %8 = tpu.matmul %6, %7, %cst_5 {dimension_numbers = #tpu.dot_dimension_numbers<[1], [0], [0], [1], [0, 0, 1, 1], [], []>} : vector<2x3xf32>, vector<3x6xf32>, vector<2x6xf32> -> vector<2x6xf32>
    %c0_6 = arith.constant 0 : index
    %c0_7 = arith.constant 0 : index
    %9 = vector.load %arg3[%c0_6, %c0_7] : memref<6x5xf32, #tpu.memory_space<vmem>>, vector<6x5xf32>
    %cst_8 = arith.constant dense<0.000000e+00> : vector<2x5xf32>
    %10 = tpu.matmul %8, %9, %cst_8 {dimension_numbers = #tpu.dot_dimension_numbers<[1], [0], [0], [1], [0, 0, 1, 1], [], []>} : vector<2x6xf32>, vector<6x5xf32>, vector<2x5xf32> -> vector<2x5xf32>
    %c0_9 = arith.constant 0 : index
    %c0_10 = arith.constant 0 : index
    %11 = vector.load %arg4[%c0_9, %c0_10] : memref<1x5xf32, #tpu.memory_space<vmem>>, vector<1x5xf32>
    %12 = vector.broadcast %11 : vector<1x5xf32> to vector<2x5xf32>
    %13 = arith.addf %10, %12 : vector<2x5xf32>
    %cst_11 = arith.constant dense<0xFF800000> : vector<2xf32>
    %14 = vector.multi_reduction <maximumf>, %13, %cst_11 [1] : vector<2x5xf32> to vector<2xf32>
    %15 = vector.shape_cast %14 : vector<2xf32> to vector<2x1xf32>
    %16 = vector.broadcast %15 : vector<2x1xf32> to vector<2x5xf32>
    %17 = arith.subf %13, %16 : vector<2x5xf32>
    %18 = math.exp %17 : vector<2x5xf32>
    %cst_12 = arith.constant dense<0.000000e+00> : vector<2xf32>
    %19 = vector.multi_reduction <add>, %18, %cst_12 [1] : vector<2x5xf32> to vector<2xf32>
    %20 = vector.shape_cast %19 : vector<2xf32> to vector<2x1xf32>
    %21 = tpu.reciprocal %20 {approx = true} : vector<2x1xf32> -> vector<2x1xf32>
    %22 = vector.broadcast %21 : vector<2x1xf32> to vector<2x5xf32>
    %23 = arith.mulf %18, %22 : vector<2x5xf32>
    %c0_13 = arith.constant 0 : index
    %c0_14 = arith.constant 0 : index
    %24 = vector.load %arg6[%c0_13, %c0_14] : memref<18x32xf32, #tpu.memory_space<vmem>>, vector<18x32xf32>
    %c0_15 = arith.constant 0 : index
    %c0_16 = arith.constant 0 : index
    %25 = vector.load %arg7[%c0_15, %c0_16] : memref<192x108xf32, #tpu.memory_space<vmem>>, vector<192x108xf32>
    %c0_17 = arith.constant 0 : index
    %c0_18 = arith.constant 0 : index
    %c0_19 = arith.constant 0 : index
    %26 = vector.load %arg5[%c0_17, %c0_18, %c0_19] : memref<5x32x192xf32, #tpu.memory_space<vmem>>, vector<1x32x192xf32>
    %27 = vector.shape_cast %26 : vector<1x32x192xf32> to vector<32x192xf32>
    %c1 = arith.constant 1 : index
    %c0_20 = arith.constant 0 : index
    %c0_21 = arith.constant 0 : index
    %28 = vector.load %arg5[%c1, %c0_20, %c0_21] : memref<5x32x192xf32, #tpu.memory_space<vmem>>, vector<1x32x192xf32>
    %29 = vector.shape_cast %28 : vector<1x32x192xf32> to vector<32x192xf32>
    %c2 = arith.constant 2 : index
    %c0_22 = arith.constant 0 : index
    %c0_23 = arith.constant 0 : index
    %30 = vector.load %arg5[%c2, %c0_22, %c0_23] : memref<5x32x192xf32, #tpu.memory_space<vmem>>, vector<1x32x192xf32>
    %31 = vector.shape_cast %30 : vector<1x32x192xf32> to vector<32x192xf32>
    %c3 = arith.constant 3 : index
    %c0_24 = arith.constant 0 : index
    %c0_25 = arith.constant 0 : index
    %32 = vector.load %arg5[%c3, %c0_24, %c0_25] : memref<5x32x192xf32, #tpu.memory_space<vmem>>, vector<1x32x192xf32>
    %33 = vector.shape_cast %32 : vector<1x32x192xf32> to vector<32x192xf32>
    %c4 = arith.constant 4 : index
    %c0_26 = arith.constant 0 : index
    %c0_27 = arith.constant 0 : index
    %34 = vector.load %arg5[%c4, %c0_26, %c0_27] : memref<5x32x192xf32, #tpu.memory_space<vmem>>, vector<1x32x192xf32>
    %35 = vector.shape_cast %34 : vector<1x32x192xf32> to vector<32x192xf32>
    %c0_28 = arith.constant 0 : index
    %c0_29 = arith.constant 0 : index
    %c0_30 = arith.constant 0 : index
    %36 = vector.load %arg8[%c0_28, %c0_29, %c0_30] : memref<3x108x96xf32, #tpu.memory_space<vmem>>, vector<1x108x96xf32>
    %37 = vector.shape_cast %36 : vector<1x108x96xf32> to vector<108x96xf32>
    %c1_31 = arith.constant 1 : index
    %c0_32 = arith.constant 0 : index
    %c0_33 = arith.constant 0 : index
    %38 = vector.load %arg8[%c1_31, %c0_32, %c0_33] : memref<3x108x96xf32, #tpu.memory_space<vmem>>, vector<1x108x96xf32>
    %39 = vector.shape_cast %38 : vector<1x108x96xf32> to vector<108x96xf32>
    %c2_34 = arith.constant 2 : index
    %c0_35 = arith.constant 0 : index
    %c0_36 = arith.constant 0 : index
    %40 = vector.load %arg8[%c2_34, %c0_35, %c0_36] : memref<3x108x96xf32, #tpu.memory_space<vmem>>, vector<1x108x96xf32>
    %41 = vector.shape_cast %40 : vector<1x108x96xf32> to vector<108x96xf32>
    %42 = vector.extract_strided_slice %23 {offsets = [0, 0], sizes = [1, 1], strides = [1, 1]} : vector<2x5xf32> to vector<1x1xf32>
    %43 = vector.broadcast %42 : vector<1x1xf32> to vector<32x192xf32>
    %44 = arith.mulf %43, %27 : vector<32x192xf32>
    %45 = vector.extract_strided_slice %23 {offsets = [0, 1], sizes = [1, 1], strides = [1, 1]} : vector<2x5xf32> to vector<1x1xf32>
    %46 = vector.broadcast %45 : vector<1x1xf32> to vector<32x192xf32>
    %47 = arith.mulf %46, %29 : vector<32x192xf32>
    %48 = arith.addf %44, %47 : vector<32x192xf32>
    %49 = vector.extract_strided_slice %23 {offsets = [0, 2], sizes = [1, 1], strides = [1, 1]} : vector<2x5xf32> to vector<1x1xf32>
    %50 = vector.broadcast %49 : vector<1x1xf32> to vector<32x192xf32>
    %51 = arith.mulf %50, %31 : vector<32x192xf32>
    %52 = arith.addf %48, %51 : vector<32x192xf32>
    %53 = vector.extract_strided_slice %23 {offsets = [0, 3], sizes = [1, 1], strides = [1, 1]} : vector<2x5xf32> to vector<1x1xf32>
    %54 = vector.broadcast %53 : vector<1x1xf32> to vector<32x192xf32>
    %55 = arith.mulf %54, %33 : vector<32x192xf32>
    %56 = arith.addf %52, %55 : vector<32x192xf32>
    %57 = vector.extract_strided_slice %23 {offsets = [0, 4], sizes = [1, 1], strides = [1, 1]} : vector<2x5xf32> to vector<1x1xf32>
    %58 = vector.broadcast %57 : vector<1x1xf32> to vector<32x192xf32>
    %59 = arith.mulf %58, %35 : vector<32x192xf32>
    %60 = arith.addf %56, %59 : vector<32x192xf32>
    %cst_37 = arith.constant dense<0.000000e+00> : vector<18x192xf32>
    %61 = tpu.matmul %24, %60, %cst_37 {dimension_numbers = #tpu.dot_dimension_numbers<[1], [0], [0], [1], [0, 0, 1, 1], [], []>} : vector<18x32xf32>, vector<32x192xf32>, vector<18x192xf32> -> vector<18x192xf32>
    %cst_38 = arith.constant dense<0.000000e+00> : vector<18x108xf32>
    %62 = tpu.matmul %61, %25, %cst_38 {dimension_numbers = #tpu.dot_dimension_numbers<[1], [0], [0], [1], [0, 0, 1, 1], [], []>} : vector<18x192xf32>, vector<192x108xf32>, vector<18x108xf32> -> vector<18x108xf32>
    %63 = vector.extract_strided_slice %62 {offsets = [0, 0], sizes = [16, 108], strides = [1, 1]} : vector<18x108xf32> to vector<16x108xf32>
    %cst_39 = arith.constant dense<0.000000e+00> : vector<16x96xf32>
    %64 = tpu.matmul %63, %37, %cst_39 {dimension_numbers = #tpu.dot_dimension_numbers<[1], [0], [0], [1], [0, 0, 1, 1], [], []>} : vector<16x108xf32>, vector<108x96xf32>, vector<16x96xf32> -> vector<16x96xf32>
    %65 = vector.extract_strided_slice %62 {offsets = [1, 0], sizes = [16, 108], strides = [1, 1]} : vector<18x108xf32> to vector<16x108xf32>
    %cst_40 = arith.constant dense<0.000000e+00> : vector<16x96xf32>
    %66 = tpu.matmul %65, %39, %cst_40 {dimension_numbers = #tpu.dot_dimension_numbers<[1], [0], [0], [1], [0, 0, 1, 1], [], []>} : vector<16x108xf32>, vector<108x96xf32>, vector<16x96xf32> -> vector<16x96xf32>
    %67 = arith.addf %64, %66 : vector<16x96xf32>
    %68 = vector.extract_strided_slice %62 {offsets = [2, 0], sizes = [16, 108], strides = [1, 1]} : vector<18x108xf32> to vector<16x108xf32>
    %cst_41 = arith.constant dense<0.000000e+00> : vector<16x96xf32>
    %69 = tpu.matmul %68, %41, %cst_41 {dimension_numbers = #tpu.dot_dimension_numbers<[1], [0], [0], [1], [0, 0, 1, 1], [], []>} : vector<16x108xf32>, vector<108x96xf32>, vector<16x96xf32> -> vector<16x96xf32>
    %70 = arith.addf %67, %69 : vector<16x96xf32>
    %c0_42 = arith.constant 0 : index
    %c0_43 = arith.constant 0 : index
    %c0_44 = arith.constant 0 : index
    %71 = vector.load %arg9[%c0_42, %c0_43, %c0_44] : memref<2x16x96xf32, #tpu.memory_space<vmem>>, vector<1x16x96xf32>
    %72 = vector.shape_cast %71 : vector<1x16x96xf32> to vector<16x96xf32>
    %73 = vector.shape_cast %70 : vector<16x96xf32> to vector<1x16x96xf32>
    tpu.vector_store %arg9[%c0_42, %c0_43, %c0_44], %73 {strides = array<i32>} : memref<2x16x96xf32, #tpu.memory_space<vmem>>, vector<1x16x96xf32>,
    %74 = vector.extract_strided_slice %23 {offsets = [1, 0], sizes = [1, 1], strides = [1, 1]} : vector<2x5xf32> to vector<1x1xf32>
    %75 = vector.broadcast %74 : vector<1x1xf32> to vector<32x192xf32>
    %76 = arith.mulf %75, %27 : vector<32x192xf32>
    %77 = vector.extract_strided_slice %23 {offsets = [1, 1], sizes = [1, 1], strides = [1, 1]} : vector<2x5xf32> to vector<1x1xf32>
    %78 = vector.broadcast %77 : vector<1x1xf32> to vector<32x192xf32>
    %79 = arith.mulf %78, %29 : vector<32x192xf32>
    %80 = arith.addf %76, %79 : vector<32x192xf32>
    %81 = vector.extract_strided_slice %23 {offsets = [1, 2], sizes = [1, 1], strides = [1, 1]} : vector<2x5xf32> to vector<1x1xf32>
    %82 = vector.broadcast %81 : vector<1x1xf32> to vector<32x192xf32>
    %83 = arith.mulf %82, %31 : vector<32x192xf32>
    %84 = arith.addf %80, %83 : vector<32x192xf32>
    %85 = vector.extract_strided_slice %23 {offsets = [1, 3], sizes = [1, 1], strides = [1, 1]} : vector<2x5xf32> to vector<1x1xf32>
    %86 = vector.broadcast %85 : vector<1x1xf32> to vector<32x192xf32>
    %87 = arith.mulf %86, %33 : vector<32x192xf32>
    %88 = arith.addf %84, %87 : vector<32x192xf32>
    %89 = vector.extract_strided_slice %23 {offsets = [1, 4], sizes = [1, 1], strides = [1, 1]} : vector<2x5xf32> to vector<1x1xf32>
    %90 = vector.broadcast %89 : vector<1x1xf32> to vector<32x192xf32>
    %91 = arith.mulf %90, %35 : vector<32x192xf32>
    %92 = arith.addf %88, %91 : vector<32x192xf32>
    %cst_45 = arith.constant dense<0.000000e+00> : vector<18x192xf32>
    %93 = tpu.matmul %24, %92, %cst_45 {dimension_numbers = #tpu.dot_dimension_numbers<[1], [0], [0], [1], [0, 0, 1, 1], [], []>} : vector<18x32xf32>, vector<32x192xf32>, vector<18x192xf32> -> vector<18x192xf32>
    %cst_46 = arith.constant dense<0.000000e+00> : vector<18x108xf32>
    %94 = tpu.matmul %93, %25, %cst_46 {dimension_numbers = #tpu.dot_dimension_numbers<[1], [0], [0], [1], [0, 0, 1, 1], [], []>} : vector<18x192xf32>, vector<192x108xf32>, vector<18x108xf32> -> vector<18x108xf32>
    %95 = vector.extract_strided_slice %94 {offsets = [0, 0], sizes = [16, 108], strides = [1, 1]} : vector<18x108xf32> to vector<16x108xf32>
    %cst_47 = arith.constant dense<0.000000e+00> : vector<16x96xf32>
    %96 = tpu.matmul %95, %37, %cst_47 {dimension_numbers = #tpu.dot_dimension_numbers<[1], [0], [0], [1], [0, 0, 1, 1], [], []>} : vector<16x108xf32>, vector<108x96xf32>, vector<16x96xf32> -> vector<16x96xf32>
    %97 = vector.extract_strided_slice %94 {offsets = [1, 0], sizes = [16, 108], strides = [1, 1]} : vector<18x108xf32> to vector<16x108xf32>
    %cst_48 = arith.constant dense<0.000000e+00> : vector<16x96xf32>
    %98 = tpu.matmul %97, %39, %cst_48 {dimension_numbers = #tpu.dot_dimension_numbers<[1], [0], [0], [1], [0, 0, 1, 1], [], []>} : vector<16x108xf32>, vector<108x96xf32>, vector<16x96xf32> -> vector<16x96xf32>
    %99 = arith.addf %96, %98 : vector<16x96xf32>
    %100 = vector.extract_strided_slice %94 {offsets = [2, 0], sizes = [16, 108], strides = [1, 1]} : vector<18x108xf32> to vector<16x108xf32>
    %cst_49 = arith.constant dense<0.000000e+00> : vector<16x96xf32>
    %101 = tpu.matmul %100, %41, %cst_49 {dimension_numbers = #tpu.dot_dimension_numbers<[1], [0], [0], [1], [0, 0, 1, 1], [], []>} : vector<16x108xf32>, vector<108x96xf32>, vector<16x96xf32> -> vector<16x96xf32>
    %102 = arith.addf %99, %101 : vector<16x96xf32>
    %c1_50 = arith.constant 1 : index
    %c0_51 = arith.constant 0 : index
    %c0_52 = arith.constant 0 : index
    %103 = vector.load %arg9[%c1_50, %c0_51, %c0_52] : memref<2x16x96xf32, #tpu.memory_space<vmem>>, vector<1x16x96xf32>
    %104 = vector.shape_cast %103 : vector<1x16x96xf32> to vector<16x96xf32>
    %105 = vector.shape_cast %102 : vector<16x96xf32> to vector<1x16x96xf32>
    tpu.vector_store %arg9[%c1_50, %c0_51, %c0_52], %105 {strides = array<i32>} : memref<2x16x96xf32, #tpu.memory_space<vmem>>, vector<1x16x96xf32>,
    return
  }
  func.func @transform_0(%arg0: i32) -> (i32, i32, i32) {
    %c0_i32 = arith.constant 0 : i32
    %c0_i32_0 = arith.constant 0 : i32
    %c0_i32_1 = arith.constant 0 : i32
    return %arg0, %c0_i32, %c0_i32_0 : i32, i32, i32
  }
  func.func @transform_1(%arg0: i32) -> (i32, i32) {
    %c0_i32 = arith.constant 0 : i32
    %c0_i32_0 = arith.constant 0 : i32
    %c0_i32_1 = arith.constant 0 : i32
    return %c0_i32, %c0_i32_0 : i32, i32
  }
  func.func @transform_2(%arg0: i32) -> (i32, i32) {
    %c0_i32 = arith.constant 0 : i32
    %c0_i32_0 = arith.constant 0 : i32
    %c0_i32_1 = arith.constant 0 : i32
    return %c0_i32, %c0_i32_0 : i32, i32
  }
  func.func @transform_3(%arg0: i32) -> (i32, i32) {
    %c0_i32 = arith.constant 0 : i32
    %c0_i32_0 = arith.constant 0 : i32
    %c0_i32_1 = arith.constant 0 : i32
    return %c0_i32, %c0_i32_0 : i32, i32
  }
  func.func @transform_4(%arg0: i32) -> (i32, i32, i32) {
    %c0_i32 = arith.constant 0 : i32
    %c0_i32_0 = arith.constant 0 : i32
    %c0_i32_1 = arith.constant 0 : i32
    %c0_i32_2 = arith.constant 0 : i32
    return %c0_i32, %c0_i32_0, %c0_i32_1 : i32, i32, i32
  }
  func.func @transform_5(%arg0: i32) -> (i32, i32) {
    %c0_i32 = arith.constant 0 : i32
    %c0_i32_0 = arith.constant 0 : i32
    %c0_i32_1 = arith.constant 0 : i32
    return %c0_i32, %c0_i32_0 : i32, i32
  }
  func.func @transform_6(%arg0: i32) -> (i32, i32) {
    %c0_i32 = arith.constant 0 : i32
    %c0_i32_0 = arith.constant 0 : i32
    %c0_i32_1 = arith.constant 0 : i32
    return %c0_i32, %c0_i32_0 : i32, i32
  }
  func.func @transform_7(%arg0: i32) -> (i32, i32, i32) {
    %c0_i32 = arith.constant 0 : i32
    %c0_i32_0 = arith.constant 0 : i32
    %c0_i32_1 = arith.constant 0 : i32
    %c0_i32_2 = arith.constant 0 : i32
    return %c0_i32, %c0_i32_0, %c0_i32_1 : i32, i32, i32
  }
  func.func @transform_8(%arg0: i32) -> (i32, i32, i32) {
    %c0_i32 = arith.constant 0 : i32
    %c0_i32_0 = arith.constant 0 : i32
    %c0_i32_1 = arith.constant 0 : i32
    return %arg0, %c0_i32, %c0_i32_0 : i32, i32, i32
  }
}

</mosaic_0001>

<bundles_post_ra>
// kernel: prompt_gen_block_pallas.1
= control target key start
LH: loop header
LB: loop body
LE: loop exit
PB: predicated region body
PF: predicated region fallthrough
CT: control target
= control target key end

     0   :  { %s1478_s27 = smov 0   ;;  %s2459_s0 = inlined_call_operand.vmem [shape: f32[4,6,256], index: 0, kind: input, shape index: {}]   ;;  %s2460_s1 = inlined_call_operand.vmem [shape: f32[3,6], index: 1, kind: input, shape index: {}]   ;;  %s2461_s2 = inlined_call_operand.vmem [shape: f32[6,5], index: 2, kind: input, shape index: {}]   ;;  %s2462_s3 = inlined_call_operand.vmem [shape: f32[1,5], index: 3, kind: input, shape index: {}]   ;;  %s2463_s4 = inlined_call_operand.vmem [shape: f32[5,32,192], index: 4, kind: input, shape index: {}]   ;;  %s2464_s5 = inlined_call_operand.vmem [shape: f32[18,32], index: 5, kind: input, shape index: {}]   ;;  %s2465_s6 = inlined_call_operand.vmem [shape: f32[192,108], index: 6, kind: input, shape index: {}]   ;;  %s2466_s7 = inlined_call_operand.vmem [shape: f32[3,108,96], index: 7, kind: input, shape index: {}]   ;;  %s2467_s8 = inlined_call_operand.vmem [shape: f32[4,16,96], index: 8, kind: output, shape index: {}]  }
   0x1 LB: > { %s1245_s28 = sadd.s32 4294967295, %s1425_s27   ;;  %p1249_p0 = scmp.ge.s32.totalorder %s1425_s27, 1  ;;  %s1425_s27 = sphi %s1478_s27, %s18_s27  }
   0x2   : > { %p264_p1 = scmp.lt.s32.totalorder %s1425_s27, 3 }
   0x4   : > { %p265_p2 = pnand %p1249_p0, %p264_p1 }
   0x6   : > { %268 = sbr.rel (%p265_p2) target bundleno = 1678 (0x68e), region = 52 }
   0xb   : > { %s1250_s29 = sshll.u32 %s1245_s28, 1  ;;  %vm318_vm0 = vcmask 1045504   ;;  %v1427_v10 = vmov 0   ;;  %v1428_v11 = vmov 256.0   ;;  %v346_v26 = vld [vmem:[%s2460_s1] sm:$0x7]  ;;  %v355_v27 = vlaneseq }
   0xc   : > { %p301_p3 = scmp.lt.s32.totalorder %s1250_s29, 3  ;;  %1410 = vset.pattern.permute.xlu1 %v1427_v10  ;;  %1411 = vset.pattern.permute.xlu0 %v1427_v10  ;;  %1413 = vrcp.f32 %v1428_v11  ;;  %vm365_vm2 = vcmask 1042432   ;;  %vm360_vm3 = vcmask 1041409   ;;  %vm362_vm4 = vcmask 23552   ;;  %v389_v35 = vld [vmem:[%s2461_s2] sm:$0x3f] }
   0xd   : > { %1256 = vmatpush.msk.msra.mxu2 %vm365_vm2, %v346_v26  ;;  %v356_v29 = vand.u32 127, %v355_v27  ;;  %1258 = vmatpush.msk.msra.mxu1 %vm318_vm0, %v389_v35  ;;  %vm394_vm5 = vcmask 48128   ;;  %v1412_v37 = vld [vmem:[%s2462_s3] ss:$0 sm:$0xff]  ;;  %vm421_vm6 = vcmask 33792   ;;  %s1429_s18 = smov 125  }
   0xe   : > { %s2520_s29 = smov (!%p301_p3, %s1250_s29), 3  ;;  %s1430_s19 = smov 126   ;;  %v1513_v59 = vld [vmem:[%s2463_s4 + $0x30] sm:$0xff]  ;;  %v1518_v60 = vld [vmem:[%s2463_s4 + $0x38] sm:$0xff]  ;;  %v1533_v63 = vld [vmem:[%s2463_s4 + $0x60] sm:$0xff]  ;;  %vm644_vm7 = vcmask 261120  }
   0xf   : > { %s1360_s30 = sshll.u32 %s2520_s29, 4  ;;  %v357_v30 = vadd.s32 3, %v356_v29  ;;  %s1431_s20 = smov 127   ;;  %v1523_v61 = vld [vmem:[%s2463_s4 + $0x70] sm:$0xff]  ;;  %v1528_v62 = vld [vmem:[%s2463_s4 + $0x78] sm:$0xff]  ;;  %v1572_v11 = vld [vmem:[%s2463_s4 + $0x28] sm:$0xff] }
  0x10   : > { %s305_s11 = scalar_lea.vmem %s2459_s0, %s1360_s30  ;;  %s1432_s21 = smov 124   ;;  %v1617_v26 = vld [vmem:[%s2463_s4 + $0xa8] sm:$0xff]  ;;  %v1626_v29 = vld [vmem:[%s2463_s4 + $0x130] sm:$0xff]  ;;  %vm782_vm8 = vcmask 1043456   ;;  %vm706_vm9 = vcmask 523264   ;;  %vm777_vm10 = vcmask 883712  }
  0x11   : > { %v314_v0 = vld [vmem:[%s305_s11] sm:$0x3f]  ;;  %v315_v1 = vld [vmem:[%s305_s11 + $0x8] sm:$0x3f]  ;;  %v316_v5 = vld [vmem:[%s305_s11 + $0x10] sm:$0x3f] }
  0x12   : > { %v319_v2 = vsel %vm318_vm0, %v314_v0, 0.0  ;;  %v320_v3 = vsel %vm318_vm0, %v315_v1, 0.0  ;;  %v317_v6 = vld [vmem:[%s305_s11 + $0x18] sm:$0x3f]  ;;  %v324_v7 = vsel %vm318_vm0, %v316_v5, 0.0  ;;  %v1414_v12 = vpop.eup %1413  ;;  %v1538_v0 = vld [vmem:[%s2463_s4 + $0x20] sm:$0xff] }
  0x13   : > { %v321_v4 = vadd.f32 %v320_v3, %v319_v2  ;;  %v325_v8 = vsel %vm318_vm0, %v317_v6, 0.0  ;;  %v330_v13 = vmul.f32 256.0, %v1414_v12  ;;  %vm334_vm1 = vweird.f32 %v1414_v12  ;;  %v1545_v2 = vld [vmem:[%s2463_s4 + $0xb0] sm:$0xff] }
  0x14   : > { %v326_v9 = vadd.f32 %v325_v8, %v324_v7  ;;  %vm771_vm11 = vcmask 1046528   ;;  %vm876_vm12 = vcmask 785408  }
  0x15   : > { %322 = vadd.xlane.f32.xlu0 %v321_v4  ;;  %v331_v14 = vsub.f32 1.0, %v330_v13  ;;  %v1552_v4 = vld [vmem:[%s2463_s4 + $0xb8] sm:$0xff] }
  0x17   : > { %v332_v15 = vmul.f32 %v1414_v12, %v331_v14 }
  0x19   : > { %v333_v16 = vadd.f32 %v1414_v12, %v332_v15  ;;  %v1586_v15 = vld [vmem:[%s2463_s4 + $0x10] sm:$0xff] }
  0x1b   : > { %v335_v17 = vsel %vm334_vm1, %v1414_v12, %v333_v16  ;;  %v1577_v12 = vld [vmem:[%s2463_s4 + $0x68] sm:$0xff]  ;;  %v1591_v16 = vld [vmem:[%s2463_s4 + $0x50] sm:$0xff] }
  0x1d   : > { %327 = vadd.xlane.f32.xlu0 %v326_v9  ;;  %v1565_v9 = vld [vmem:[%s2463_s4 + $0xa0] sm:$0xff] }
  0x88   : > { %v323_v18 = vpop.xlane.xlu0 %322 }
  0x89   : > { %v336_v19 = vmul.f32 %v335_v17, %v323_v18 }
  0x8b   : > { %v340_v20 = vrot.slane %v336_v19, 5 }
  0x8d   : > { %v344_v21 = vsub.f32 %v336_v19, %v340_v20  ;;  %v1603_v20 = vld [vmem:[%s2463_s4 + $0xf8] sm:$0xff] }
  0x8f   : > { %350 = vperm.xlu1 %1410, %v344_v21  }
  0x90   : > { %v328_v22 = vpop.xlane.xlu0 %327 }
  0x91   : > { %v337_v23 = vmul.f32 %v335_v17, %v328_v22  ;;  %v1596_v17 = vld [vmem:[%s2463_s4 + $0xf0] sm:$0xff] }
  0x93   : > { %v341_v24 = vrot.slane %v337_v23, 5 }
  0x95   : > { %v345_v25 = vsub.f32 %v337_v23, %v341_v24  ;;  %v1610_v23 = vld [vmem:[%s2463_s4 + $0xe0] sm:$0xff] }
  0x97   : > { %353 = vperm.xlu1 %1410, %v345_v25  }
 0x101   : > { %v351_v28 = vpop.permute.xlu1 %350 }
 0x102   : > { %v358_v32 = vperm.slane %v351_v28, %v357_v30 }
 0x109   : > { %v354_v31 = vpop.permute.xlu1 %353 }
 0x10a   : > { %v359_v33 = vperm.slane %v354_v31, %v357_v30  ;;  %v1631_v31 = vld [vmem:[%s2463_s4 + $0x138] sm:$0xff] }
 0x10c   : > { %v361_v34 = vsel %vm360_vm3, %v359_v33, %v358_v32 }
 0x10d   : > { %1257 = vmatmul.msk.f32.vlgmr.msra.gmra.mxu2 %vm362_vm4, %v361_v34 }
 0x190   : > { %v386_v36 = vpop.f32.mrf.mxu2 }
 0x191   : > { %1259 = vmatmul.msk.f32.vlgmr.msra.gmra.mxu1 %vm394_vm5, %v386_v36 }
 0x20e   : > { %v418_v38 = vpop.f32.mrf.mxu1 }
 0x20f   : > { %v419_v39 = vadd.f32 %v1412_v37, %v418_v38  ;;  %v1644_v37 = vld [vmem:[%s2463_s4 + $0x120] sm:$0xff] }
 0x211   : > { %v422_v40 = vsel %vm421_vm6, %v419_v39, -inf }
 0x212   : > { %423 = vmax.xlane.f32.xlu2 %v422_v40 }
 0x285   : > { %v424_v41 = vpop.xlane.xlu2 %423 }
 0x286   : > { %v425_v42 = vsub.f32 %v419_v39, %v424_v41  ;;  %v1649_v39 = vld [vmem:[%s2463_s4 + $0xe8] sm:$0xff]  ;;  %v1654_v41 = vld [vmem:[%s2463_s4 + $0x90] sm:$0xff] }
 0x288   : > { %v426_v43 = vmul.f32 1.442695, %v425_v42 }
 0x28a   : > { %1415 = vpow2.f32 %v426_v43 }
 0x290   : > { %v1416_v44 = vpop.eup %1415 }
 0x291   : > { %v428_v45 = vsel %vm421_vm6, %v1416_v44, 0.0 }
 0x292   : > { %429 = vadd.xlane.f32.xlu2 %v428_v45 }
 0x305   : > { %v430_v46 = vpop.xlane.xlu2 %429 }
 0x306   : > { %1417 = vrcp.f32 %v430_v46 }
 0x30c   : > { %v1418_v47 = vpop.eup %1417 }
 0x30d   : > { %v432_v48 = vmul.f32 %v1418_v47, %v1416_v44  ;;  %v1663_v44 = vld [vmem:[%s2463_s4 + $0x128] sm:$0xff] }
 0x30f   : > { %602 = vrot.lane.b32.xlu2 %v432_v48, %s1429_s18  ;;  %581 = vrot.lane.b32.xlu1 %v432_v48, %s1430_s19  ;;  %1376 = vpush %v432_v48  ;;  %v879_v49 = vrot.slane %v432_v48, 1 }
 0x310   : > { %560 = vrot.lane.b32.xlu0 %v432_v48, %s1431_s20 }
 0x317   : > { %623 = vrot.lane.b32.xlu1 %v432_v48, %s1432_s21  ;;  %954 = vrot.lane.b32.xlu2 %v879_v49, %s1432_s21 }
 0x318   : > { %912 = vrot.lane.b32.xlu0 %v879_v49, %s1430_s19 }
 0x31f   : > { %891 = vrot.lane.b32.xlu1 %v879_v49, %s1431_s20 }
 0x327   : > { %933 = vrot.lane.b32.xlu1 %v879_v49, %s1429_s18 }
 0x340   : > { %s1377_s22 = spop %1376 }
 0x341   : > { %v1508_v58 = vstv %s1377_s22 }
 0x342   : > { %v558_v3 = vmul.f32 %v1508_v58, %v1513_v59  ;;  %v559_v5 = vmul.f32 %v1508_v58, %v1518_v60  ;;  %v556_v14 = vmul.f32 %v1508_v58, %v1538_v0  ;;  %v557_v27 = vmul.f32 %v1508_v58, %v1572_v11 }
 0x343   : > { %v554_v33 = vmul.f32 %v1508_v58, %v1586_v15 }
 0x369   : > { %v603_v52 = vpop.permute.xlu2 %602 }
 0x371   : > { %v955_v57 = vpop.permute.xlu2 %954 }
 0x381   : > { %v582_v50 = vpop.permute.xlu1 %581 }
 0x382   : > { %v561_v51 = vpop.permute.xlu0 %560 }
 0x383   : > { %1378 = vpush %v561_v51  ;;  %v1674_v51 = vld [vmem:[%s2463_s4 + $0xd0] sm:$0xff] }
 0x384   : > { %1380 = vpush %v582_v50 }
 0x385   : > { %1382 = vpush %v603_v52  ;;  %v1679_v52 = vld [vmem:[%s2463_s4 + $0x110] sm:$0xff] }
 0x389   : > { %v624_v53 = vpop.permute.xlu1 %623 }
 0x38a   : > { %1384 = vpush %v624_v53  ;;  %v913_v55 = vpop.permute.xlu0 %912  ;;  %v1684_v53 = vld [vmem:[%s2463_s4 + $0x18] sm:$0xff] }
 0x38b   : > { %1386 = vpush %v879_v49 }
 0x391   : > { %v892_v54 = vpop.permute.xlu1 %891 }
 0x392   : > { %1388 = vpush %v892_v54 }
 0x393   : > { %1390 = vpush %v913_v55 }
 0x399   : > { %v934_v56 = vpop.permute.xlu1 %933 }
 0x39a   : > { %1392 = vpush %v934_v56 }
 0x39b   : > { %1394 = vpush %v955_v57 }
 0x3b4   : > { %s1379_s14 = spop %1378 }
 0x3b5   : > { %v1540_v1 = vstv %s1379_s14  ;;  %s1381_s17 = spop %1380 }
 0x3b6   : > { %v1556_v6 = vstv %s1381_s17  ;;  %s1383_s22 = spop %1382  ;;  %v571_v7 = vmul.f32 %v1523_v61, %v1540_v1  ;;  %v572_v8 = vmul.f32 %v1528_v62, %v1540_v1  ;;  %v569_v10 = vmul.f32 %v1533_v63, %v1540_v1 }
 0x3b7   : > { %v1579_v13 = vstv %s1383_s22  ;;  %v592_v19 = vmul.f32 %v1545_v2, %v1556_v6  ;;  %v593_v22 = vmul.f32 %v1552_v4, %v1556_v6  ;;  %v590_v25 = vmul.f32 %v1565_v9, %v1556_v6 }
 0x3b8   : > { %v579_v18 = vadd.f32 %v571_v7, %v558_v3  ;;  %v580_v21 = vadd.f32 %v572_v8, %v559_v5  ;;  %v577_v24 = vadd.f32 %v569_v10, %v556_v14  ;;  %v570_v28 = vmul.f32 %v1577_v12, %v1540_v1  ;;  %v1695_v3 = vld [vmem:[%s2463_s4 + $0x58] sm:$0xff] }
 0x3b9   : > { %v567_v34 = vmul.f32 %v1591_v16, %v1540_v1  ;;  %v613_v35 = vmul.f32 %v1596_v17, %v1579_v13  ;;  %v614_v36 = vmul.f32 %v1603_v20, %v1579_v13  ;;  %v611_v43 = vmul.f32 %v1610_v23, %v1579_v13 }
 0x3ba   : > { %v600_v30 = vadd.f32 %v592_v19, %v579_v18  ;;  %v601_v32 = vadd.f32 %v593_v22, %v580_v21  ;;  %v598_v38 = vadd.f32 %v590_v25, %v577_v24  ;;  %v578_v40 = vadd.f32 %v570_v28, %v557_v27  ;;  %v1706_v21 = vld [vmem:[%s2463_s4 + $0x98] sm:$0xff]  ;;  %v1713_v24 = vld [vmem:[%s2463_s4 + $0x40] sm:$0xff] }
 0x3bb   : > { %s1385_s26 = spop %1384  ;;  %v591_v45 = vmul.f32 %v1617_v26, %v1556_v6  ;;  %v575_v46 = vadd.f32 %v567_v34, %v554_v33  ;;  %v612_v56 = vmul.f32 %v1649_v39, %v1579_v13  ;;  %v588_v57 = vmul.f32 %v1654_v41, %v1556_v6  ;;  %v1725_v33 = vld [vmem:[%s2463_s4 + $0xd8] sm:$0xff] }
 0x3bc   : > { %v1656_v42 = vstv %s1385_s26  ;;  %v621_v47 = vadd.f32 %v613_v35, %v600_v30  ;;  %v622_v49 = vadd.f32 %v614_v36, %v601_v32  ;;  %v619_v54 = vadd.f32 %v611_v43, %v598_v38  ;;  %v1720_v30 = vld [vmem:[%s2463_s4] sm:$0xff]  ;;  %v1730_v34 = vld [vmem:[%s2463_s4 + $0x118] sm:$0xff]  ;;  %s1387_s22 = spop %1386 }
 0x3bd   : > { %v634_v48 = vmul.f32 %v1626_v29, %v1656_v42  ;;  %v635_v50 = vmul.f32 %v1631_v31, %v1656_v42  ;;  %v632_v55 = vmul.f32 %v1644_v37, %v1656_v42  ;;  %v599_v8 = vadd.f32 %v591_v45, %v578_v40  ;;  %v1737_v40 = vld [vmem:[%s2463_s4 + $0x80] sm:$0xff] }
 0x3be   : > { %v633_v10 = vmul.f32 %v1663_v44, %v1656_v42  ;;  %v596_v14 = vadd.f32 %v588_v57, %v575_v46  ;;  %v609_v18 = vmul.f32 %v1674_v51, %v1579_v13  ;;  %v630_v19 = vmul.f32 %v1679_v52, %v1656_v42 }
 0x3bf   : > { %v642_v5 = vadd.f32 %v634_v48, %v621_v47  ;;  %v643_v7 = vadd.f32 %v635_v50, %v622_v49  ;;  %v555_v22 = vmul.f32 %v1508_v58, %v1684_v53  ;;  %v640_v25 = vadd.f32 %v632_v55, %v619_v54  ;;  %v1746_v47 = vld [vmem:[%s2463_s4 + $0x8] sm:$0xff]  ;;  %v1755_v54 = vld [vmem:[%s2463_s4 + $0xc0] sm:$0xff] }
 0x3c0   : > { %v620_v27 = vadd.f32 %v612_v56, %v599_v8  ;;  %v568_v28 = vmul.f32 %v1695_v3, %v1540_v1  ;;  %v617_v32 = vadd.f32 %v609_v18, %v596_v14  ;;  %v589_v38 = vmul.f32 %v1706_v21, %v1556_v6  ;;  %v1760_v55 = vld [vmem:[%s2463_s4 + $0x100] sm:$0xff]  ;;  %v1765_v56 = vld [vmem:[%s2463_s4 + $0x48] sm:$0xff] }
 0x3c1   : > { %666 = vmatpush.msrb.mxu2 %v642_v5  ;;  %692 = vmatpush.msra.mxu3 %v643_v7  ;;  %v565_v43 = vmul.f32 %v1713_v24, %v1540_v1  ;;  %v552_v46 = vmul.f32 %v1508_v58, %v1720_v30  ;;  %v610_v49 = vmul.f32 %v1725_v33, %v1579_v13  ;;  %v1772_v8 = vld [vmem:[%s2463_s4 + $0x88] sm:$0xff] }
 0x3c2   : > { %v641_v35 = vadd.f32 %v633_v10, %v620_v27  ;;  %v576_v36 = vadd.f32 %v568_v28, %v555_v22  ;;  %v638_v45 = vadd.f32 %v630_v19, %v617_v32  ;;  %v631_v50 = vmul.f32 %v1730_v34, %v1656_v42  ;;  %v1785_v27 = vld [vmem:[%s2463_s4 + $0xc8] sm:$0xff] }
 0x3c3   : > { %667 = vmatpush.msrb.mxu2 %v640_v25  ;;  %v573_v57 = vadd.f32 %v565_v43, %v552_v46  ;;  %v586_v5 = vmul.f32 %v1737_v40, %v1556_v6  ;;  %v553_v10 = vmul.f32 %v1508_v58, %v1746_v47  ;;  %v607_v18 = vmul.f32 %v1755_v54, %v1579_v13  ;;  %v1790_v58 = vld [vmem:[%s2463_s4 + $0x108] sm:$0xff]  ;;  %v1806_v46 = vld [vmem:[%s2466_s7 + $0xd8] sm:$0xf]  ;;  %s1389_s23 = spop %1388 }
 0x3c4   : > { %693 = vmatpush.msra.mxu3 %v641_v35  ;;  %v597_v48 = vadd.f32 %v589_v38, %v576_v36  ;;  %v628_v19 = vmul.f32 %v1760_v55, %v1656_v42  ;;  %v566_v22 = vmul.f32 %v1765_v56, %v1540_v1  ;;  %v587_v35 = vmul.f32 %v1772_v8, %v1556_v6  ;;  %s1391_s11 = spop %1390 }
 0x3c5   : > { %668 = vmatpush.msrb.mxu2 %v638_v45  ;;  %v594_v14 = vadd.f32 %v586_v5, %v573_v57  ;;  %v608_v38 = vmul.f32 %v1785_v27, %v1579_v13  ;;  %v629_v43 = vmul.f32 %v1790_v58, %v1656_v42  ;;  %v1801_v45 = vld [vmem:[%s2464_s5] sm:$0xff]  ;;  %2488 = vst [vmem:[#allocation3_spill] sm:$0xff] %v1806_v46  ;;  %v1813_v13 = vld [vmem:[%s2466_s7 + $0xd0] sm:$0xff]  ;;  %v1846_v5 = vld [vmem:[%s2464_s5 + $0x8] sm:$0xff] }
 0x3c6   : > { %v618_v7 = vadd.f32 %v610_v49, %v597_v48  ;;  %v574_v32 = vadd.f32 %v566_v22, %v553_v10  ;;  %2487 = vst [vmem:[#allocation2_spill] sm:$0xff] %v1801_v45  ;;  %v1820_v48 = vld [vmem:[%s2466_s7 + $0x68] sm:$0xf]  ;;  %v1838_v57 = vld [vmem:[%s2466_s7 + $0xc0] sm:$0xff]  ;;  %v1851_v10 = vld [vmem:[%s2466_s7 + $0x58] sm:$0xff] }
 0x3c7   : > { %v615_v28 = vadd.f32 %v607_v18, %v594_v14  ;;  %2489 = vst [vmem:[#allocation4_spill] sm:$0xff] %v1813_v13  ;;  %v1825_v49 = vld [vmem:[%s2466_s7 + $0xc8] sm:$0xff]  ;;  %v1856_v14 = vld [vmem:[%s2466_s7 + $0xb8] sm:$0xff]  ;;  %v1858_v18 = vstv %s1389_s23  ;;  %v1870_v22 = vld [vmem:[%s2466_s7 + $0x50] sm:$0xff] }
 0x3c8   : > { %v639_v25 = vadd.f32 %v631_v50, %v618_v7  ;;  %v595_v1 = vadd.f32 %v587_v35, %v574_v32  ;;  %2490 = vst [vmem:[#allocation5_spill] sm:$0xff] %v1825_v49  ;;  %v1833_v50 = vld [vmem:[%s2466_s7 + $0x60] sm:$0xff]  ;;  %v881_v7 = vstv %s1387_s22  ;;  %v1880_v32 = vstv %s1391_s11  ;;  %v1887_v35 = vld [vmem:[%s2465_s6 + $0x70] sm:$0xff] }
 0x3c9   : > { %v636_v36 = vadd.f32 %v628_v19, %v615_v28  ;;  %2491 = vst [vmem:[#allocation6_spill] sm:$0xff] %v1838_v57  ;;  %v1865_v19 = vld [vmem:[%s2465_s6 + $0x78] sm:$0xff]  ;;  %v889_v28 = vmul.f32 %v881_v7, %v1513_v59  ;;  %v1897_v59 = vld [vmem:[%s2466_s7 + $0x48] sm:$0xff] }
 0x3ca   : > { %694 = vmatpush.msra.mxu3 %v639_v25  ;;  %v616_v6 = vadd.f32 %v608_v38, %v595_v1  ;;  %2492 = vst [vmem:[#allocation7_spill] sm:$0xff] %v1846_v5  ;;  %v1877_v25 = vld [vmem:[%s2466_s7 + $0xb0] sm:$0xff]  ;;  %v887_v1 = vmul.f32 %v881_v7, %v1538_v0  ;;  %v1892_v38 = vmul.f32 %v881_v7, %v1572_v11 }
 0x3cb   : > { %669 = vmatpush.msrb.mxu2 %v636_v36  ;;  %2493 = vst [vmem:[#allocation8_spill] sm:$0xff] %v1856_v14  ;;  %v890_v36 = vmul.f32 %v881_v7, %v1518_v60  ;;  %s1393_s24 = spop %1392  ;;  %716 = vmatpush.msra.mxu0 %v1865_v19  ;;  %v1908_v60 = vmul.f32 %v881_v7, %v1586_v15  ;;  %v1927_v15 = vld [vmem:[%s2465_s6 + $0xb8] sm:$0xff] }
 0x3cc   : > { %1320 = vmatmul.msk.f32.vlgmr.msrb.gmra.mxu2 %vm644_vm7, %v1801_v45  ;;  %v637_v42 = vadd.f32 %v629_v43, %v616_v6  ;;  %2494 = vst [vmem:[#allocation9_spill] sm:$0xff] %v1870_v22  ;;  %v1902_v43 = vld [vmem:[%s2466_s7 + $0xa8] sm:$0xff]  ;;  %v902_v6 = vmul.f32 %v1523_v61, %v1858_v18  ;;  %v1912_v0 = vmul.f32 %v1591_v16, %v1858_v18  ;;  %s1395_s14 = spop %1394 }
 0x3cd   : > { %1329 = vmatpush.msk.msra.mxu2 %vm782_vm8, %v1806_v46  ;;  %2495 = vst [vmem:[#allocation10_spill] sm:$0xff] %v1877_v25  ;;  %v1915_v11 = vmul.f32 %v881_v7, %v1684_v53  ;;  %v1922_v61 = vld [vmem:[%s2465_s6 + $0x68] sm:$0xff]  ;;  %v1931_v16 = vmul.f32 %v1654_v41, %v1880_v32  ;;  %v1935_v53 = vmul.f32 %v1695_v3, %v1858_v18  ;;  %v2004_v46 = vstv %s1395_s14 }
 0x3ce   : > { %695 = vmatpush.msra.mxu3 %v637_v42  ;;  %2496 = vst [vmem:[#allocation11_spill] sm:$0xff] %v1897_v59  ;;  %v1942_v42 = vld [vmem:[%s2466_s7 + $0x40] sm:$0xff]  ;;  %v903_v41 = vmul.f32 %v1528_v62, %v1858_v18  ;;  %717 = vmatpush.msra.mxu0 %v1887_v35  ;;  %v1954_v3 = vmul.f32 %v1706_v21, %v1880_v32 }
 0x3cf   : > { %789 = vmatpush.msra.mxu2 %v1813_v13  ;;  %1323 = vmatmul.msk.f32.vlgmr.msra.gmra.mxu3 %vm644_vm7, %v1801_v45  ;;  %2497 = vst [vmem:[#allocation12_spill] sm:$0xff] %v1902_v43  ;;  %v900_v62 = vmul.f32 %v1533_v63, %v1858_v18  ;;  %v1973_v21 = vld [vmem:[%s2465_s6 + $0x60] sm:$0xff]  ;;  %v1989_v63 = vld [vmem:[%s2466_s7 + $0x98] sm:$0xff]  ;;  %v910_v45 = vadd.f32 %v902_v6, %v889_v28 }
 0x3d0   : > { %1332 = vmatpush.msk.msrb.mxu3 %vm782_vm8, %v1820_v48  ;;  %2498 = vst [vmem:[#allocation13_spill] sm:$0xff] %v1942_v42  ;;  %718 = vmatpush.msra.mxu0 %v1922_v61  ;;  %v2002_v13 = vmul.f32 %v1772_v8, %v1880_v32  ;;  %v2011_v28 = vld [vmem:[%s2465_s6 + $0x58] sm:$0xff]  ;;  %v2028_v8 = vld [vmem:[%s2466_s7 + $0x90] sm:$0xff] }
 0x3d1   : > { %790 = vmatpush.msra.mxu2 %v1825_v49  ;;  %v1979_v49 = vmul.f32 %v1737_v40, %v1880_v32  ;;  %2501 = vst [vmem:[#allocation16_spill] sm:$0xff] %v1989_v63  ;;  %750 = vmatpush.msrb.mxu1 %v1927_v15  ;;  %v1998_v40 = vmul.f32 %v1765_v56, %v1858_v18  ;;  %v2021_v56 = vld [vmem:[%s2466_s7 + $0x30] sm:$0xff] }
 0x3d2   : > { %819 = vmatpush.msrb.mxu3 %v1833_v50  ;;  %2502 = vst [vmem:[#allocation17_spill] sm:$0xff] %v2028_v8  ;;  %719 = vmatpush.msra.mxu0 %v1973_v21 }
 0x3d3   : > { %791 = vmatpush.msra.mxu2 %v1838_v57  ;;  %v1966_v57 = vld [vmem:[%s2464_s5 + $0x10] sm:$0x3] }
 0x3d4   : > { %1321 = vmatmul.msk.f32.gmra.mxu2 %vm644_vm7, %v1846_v5  ;;  %820 = vmatpush.msrb.mxu3 %v1851_v10  ;;  %2500 = vst [vmem:[#allocation15_spill] sm:$0xff] %v1966_v57 }
 0x3d5   : > { %792 = vmatpush.msra.mxu2 %v1856_v14  ;;  %v1959_v14 = vstv %s1393_s24  ;;  %720 = vmatpush.msra.mxu0 %v2011_v28  ;;  %s2433_s24 = scalar_lea.vmem %s2467_s8, %s1360_s30 }
 0x3d6   : > { %821 = vmatpush.msrb.mxu3 %v1870_v22  ;;  %v944_v6 = vmul.f32 %v1596_v17, %v1959_v14  ;;  %v901_v22 = vmul.f32 %v1577_v12, %v1858_v18  ;;  %v2049_v17 = vld [vmem:[%s2466_s7 + $0x28] sm:$0xff]  ;;  %v945_v12 = vmul.f32 %v1603_v20, %v1959_v14 }
 0x3d7   : > { %793 = vmatpush.msra.mxu2 %v1877_v25  ;;  %1324 = vmatmul.msk.f32.gmra.mxu3 %vm644_vm7, %v1846_v5  ;;  %v1947_v25 = vld [vmem:[%s2466_s7 + $0xa0] sm:$0xff]  ;;  %v1957_v5 = vmul.f32 %v881_v7, %v1720_v30  ;;  %v896_v30 = vmul.f32 %v1713_v24, %v1858_v18  ;;  %v1994_v24 = vmul.f32 %v881_v7, %v1746_v47  ;;  %v2016_v47 = vld [vmem:[%s2465_s6 + $0xb0] sm:$0xff]  ;;  %v2075_v20 = vld [vmem:[%s2465_s6 + $0x48] sm:$0xff] }
 0x3d8   : > { %2499 = vst [vmem:[#allocation14_spill] sm:$0xff] %v1947_v25  ;;  %822 = vmatpush.msrb.mxu3 %v1897_v59  ;;  %v923_v7 = vmul.f32 %v1545_v2, %v1880_v32  ;;  %v908_v59 = vadd.f32 %v900_v62, %v887_v1  ;;  %v2044_v2 = vld [vmem:[%s2465_s6 + $0x50] sm:$0xff]  ;;  %v965_v1 = vmul.f32 %v1626_v29, %v2004_v46 }
 0x3d9   : > { %794 = vmatpush.msra.mxu2 %v1902_v43  ;;  %v1984_v43 = vld [vmem:[%s2466_s7 + $0x38] sm:$0xff]  ;;  %751 = vmatpush.msrb.mxu1 %v2016_v47  ;;  %v2066_v18 = vmul.f32 %v1631_v31, %v2004_v46  ;;  %v942_v29 = vmul.f32 %v1610_v23, %v1959_v14  ;;  %v2092_v23 = vld [vmem:[%s2466_s7 + $0x80] sm:$0xff] }
 0x3da   : > { %823 = vmatpush.msrb.mxu3 %v1942_v42  ;;  %v924_v42 = vmul.f32 %v1552_v4, %v1880_v32  ;;  %v931_v4 = vadd.f32 %v923_v7, %v910_v45  ;;  %v921_v45 = vmul.f32 %v1565_v9, %v1880_v32  ;;  %v2087_v9 = vld [vmem:[%s2466_s7 + $0x20] sm:$0xff]  ;;  %v906_v7 = vadd.f32 %v1912_v0, %v1908_v60  ;;  %v2115_v60 = vld [vmem:[%s2466_s7 + $0x18] sm:$0xff] }
 0x3db   : > { %795 = vmatpush.msra.mxu2 %v1947_v25  ;;  %v911_v25 = vadd.f32 %v903_v41, %v890_v36  ;;  %v2054_v36 = vld [vmem:[%s2466_s7 + $0x88] sm:$0xff]  ;;  %721 = vmatpush.msra.mxu0 %v2044_v2 }
 0x3dc   : > { %1322 = vmatmul.msk.f32.gmra.mxu2 %vm644_vm7, %v1966_v57  ;;  %824 = vmatpush.msrb.mxu3 %v1984_v43  ;;  %v2080_v41 = vld [vmem:[%s2465_s6 + $0xa8] sm:$0xff]  ;;  %v952_v31 = vadd.f32 %v944_v6, %v931_v4  ;;  %v2105_v6 = vld [vmem:[%s2465_s6 + $0x40] sm:$0xff]  ;;  %v943_v4 = vmul.f32 %v1649_v39, %v1959_v14  ;;  %v927_v39 = vadd.f32 %v1931_v16, %v906_v7 }
 0x3dd   : > { %796 = vmatpush.msra.mxu2 %v1989_v63  ;;  %v932_v62 = vadd.f32 %v924_v42, %v911_v25  ;;  %v909_v63 = vadd.f32 %v901_v22, %v1892_v38  ;;  %v2110_v25 = vld [vmem:[%s2465_s6 + $0xa0] sm:$0xff]  ;;  %v940_v38 = vmul.f32 %v1674_v51, %v1959_v14  ;;  %722 = vmatpush.msra.mxu0 %v2075_v20  ;;  %v2136_v51 = vld [vmem:[%s2465_s6 + $0x38] sm:$0xff] }
 0x3de   : > { %825 = vmatpush.msrb.mxu3 %v2021_v56  ;;  %752 = vmatpush.msrb.mxu1 %v2080_v41  ;;  %v922_v42 = vmul.f32 %v1617_v26, %v1880_v32  ;;  %v2151_v26 = vld [vmem:[%s2466_s7 + $0x70] sm:$0xff]  ;;  %v907_v32 = vadd.f32 %v1935_v53, %v1915_v11 }
 0x3df   : > { %797 = vmatpush.msra.mxu2 %v2028_v8  ;;  %1325 = vmatmul.msk.f32.gmra.mxu3 %vm644_vm7, %v1966_v57  ;;  %v929_v57 = vadd.f32 %v921_v45, %v908_v59  ;;  %v963_v8 = vmul.f32 %v1644_v37, %v2004_v46  ;;  %v2120_v37 = vld [vmem:[%s2466_s7 + $0x78] sm:$0xff]  ;;  %v953_v22 = vadd.f32 %v945_v12, %v932_v62  ;;  %v2167_v11 = vld [vmem:[%s2465_s6 + $0x30] sm:$0xff] }
 0x3e0   : > { %826 = vmatpush.msrb.mxu3 %v2049_v17  ;;  %v904_v59 = vadd.f32 %v896_v30, %v1957_v5  ;;  %v2141_v5 = vld [vmem:[%s2465_s6 + $0x98] sm:$0xff]  ;;  %v938_v30 = vmul.f32 %v1755_v54, %v1959_v14  ;;  %723 = vmatpush.msra.mxu0 %v2105_v6  ;;  %v973_v12 = vadd.f32 %v965_v1, %v952_v31  ;;  %v2172_v54 = vld [vmem:[%s2466_s7 + $0x8] sm:$0xff] }
 0x3e1   : > { %798 = vmatpush.msra.mxu2 %v2054_v36  ;;  %v950_v0 = vadd.f32 %v942_v29, %v929_v57  ;;  %v2146_v57 = vld [vmem:[%s2466_s7 + $0x10] sm:$0xff]  ;;  %753 = vmatpush.msrb.mxu1 %v2110_v25  ;;  %v930_v45 = vadd.f32 %v922_v42, %v909_v63  ;;  %v941_v29 = vmul.f32 %v1725_v33, %v1959_v14  ;;  %v440_v42 = vld [vmem:[%s2465_s6 + $0x20] sm:$0xff] }
 0x3e2   : > { %827 = vmatpush.msrb.mxu3 %v2087_v9  ;;  %v948_v16 = vadd.f32 %v940_v38, %v927_v39  ;;  %v925_v53 = vadd.f32 %v1979_v49, %v904_v59  ;;  %v905_v1 = vadd.f32 %v1998_v40, %v1994_v24  ;;  %724 = vmatpush.msra.mxu0 %v2136_v51  ;;  %v2182_v33 = vld [vmem:[%s2465_s6 + $0x90] sm:$0xff]  ;;  %v441_v24 = vld [vmem:[%s2465_s6 + $0x28] sm:$0xff]  ;;  %v2194_v40 = vld [vmem:[%s2466_s7] sm:$0xff] }
 0x3e3   : > { %799 = vmatpush.msra.mxu2 %v2092_v23  ;;  %754 = vmatpush.msrb.mxu1 %v2141_v5  ;;  %v971_v63 = vadd.f32 %v963_v8, %v950_v0  ;;  %v951_v31 = vadd.f32 %v943_v4, %v930_v45  ;;  %v961_v49 = vmul.f32 %v1679_v52, %v2004_v46  ;;  %v2203_v52 = vld [vmem:[%s2465_s6 + $0x88] sm:$0xff] }
 0x3e4   : > { %828 = vmatpush.msrb.mxu3 %v2115_v60  ;;  %v928_v62 = vadd.f32 %v1954_v3, %v907_v32  ;;  %v946_v7 = vadd.f32 %v938_v30, %v925_v53  ;;  %v939_v8 = vmul.f32 %v1785_v27, %v1959_v14  ;;  %725 = vmatpush.msra.mxu0 %v2167_v11  ;;  %v437_v30 = vld [vmem:[%s2465_s6 + $0x8] sm:$0xff] }
 0x3e5   : > { %800 = vmatpush.msra.mxu2 %v2120_v37  ;;  %v974_v38 = vadd.f32 %v2066_v18, %v953_v22  ;;  %v964_v59 = vmul.f32 %v1663_v44, %v2004_v46  ;;  %v959_v3 = vmul.f32 %v1760_v55, %v2004_v46  ;;  %755 = vmatpush.msrb.mxu1 %v2182_v33  ;;  %v2312_v53 = vld [vmem:[%s2466_s7 + $0x108] sm:$0xff] }
 0x3e6   : > { %829 = vmatpush.msrb.mxu3 %v2146_v57  ;;  %v969_v27 = vadd.f32 %v961_v49, %v948_v16  ;;  %v949_v14 = vadd.f32 %v941_v29, %v928_v62  ;;  %v926_v0 = vadd.f32 %v2002_v13, %v905_v1  ;;  %726 = vmatpush.msra.mxu0 %v441_v24  ;;  %v439_v13 = vld [vmem:[%s2465_s6 + $0x18] sm:$0xff]  ;;  %v2307_v16 = vld [vmem:[%s2466_s7 + $0x110] sm:$0xff]  ;;  %v2319_v1 = vld [vmem:[%s2466_s7 + $0x100] sm:$0xff] }
 0x3e7   : > { %801 = vmatpush.msra.mxu2 %v2151_v26  ;;  %v962_v44 = vmul.f32 %v1730_v34, %v2004_v46  ;;  %756 = vmatpush.msrb.mxu1 %v2203_v52  ;;  %v972_v55 = vadd.f32 %v964_v59, %v951_v31  ;;  %v967_v18 = vadd.f32 %v959_v3, %v946_v7  ;;  %v438_v34 = vld [vmem:[%s2465_s6 + $0x10] sm:$0xff]  ;;  %v2340_v49 = vld [vmem:[%s2466_s7 + $0xe8] sm:$0xff] }
 0x3e8   : > { %830 = vmatpush.msrb.mxu3 %v2172_v54  ;;  %v947_v22 = vadd.f32 %v939_v8, %v926_v0  ;;  %727 = vmatpush.msra.mxu0 %v440_v42  ;;  %v960_v39 = vmul.f32 %v1790_v58, %v2004_v46  ;;  %v2237_v58 = vld [vmem:[%s2465_s6 + $0x80] sm:$0xff]  ;;  %v2251_v46 = vld [vmem:[%s2466_s7 + $0x148] sm:$0xf]  ;;  %v2335_v31 = vld [vmem:[%s2466_s7 + $0xf0] sm:$0xff] }
 0x3e9   : > { %987 = vmatpush.msrb.mxu2 %v973_v12  ;;  %v970_v4 = vadd.f32 %v962_v44, %v949_v14  ;;  %v436_v12 = vld [vmem:[%s2465_s6] sm:$0xff]  ;;  %757 = vmatpush.msrb.mxu1 %v2237_v58  ;;  %v2504_v59 = vld [vmem:[#allocation11_spill] sm:$0xff] }
 0x3ea   : > { %831 = vmatpush.msrb.mxu3 %v2194_v40  ;;  %728 = vmatpush.msra.mxu0 %v439_v13  ;;  %v968_v32 = vadd.f32 %v960_v39, %v947_v22  ;;  %v2509_v22 = vld [vmem:[#allocation5_spill] sm:$0xff]  ;;  %v2510_v39 = vld [vmem:[#allocation6_spill] sm:$0xff] }
 0x3eb   : > { %988 = vmatpush.msrb.mxu2 %v971_v63  ;;  %1335 = vmatpush.msk.msra.mxu1 %vm782_vm8, %v2251_v46  ;;  %v2326_v63 = vld [vmem:[%s2466_s7 + $0xf8] sm:$0xff] }
 0x3ec   : > { %1013 = vmatpush.msra.mxu3 %v974_v38  ;;  %729 = vmatpush.msra.mxu0 %v438_v34 }
 0x3ed   : > { %989 = vmatpush.msrb.mxu2 %v969_v27  ;;  %v2506_v27 = vld [vmem:[#allocation13_spill] sm:$0xff] }
 0x3ee   : > { %1014 = vmatpush.msra.mxu3 %v972_v55  ;;  %730 = vmatpush.msra.mxu0 %v437_v30 }
 0x3ef   : > { %990 = vmatpush.msrb.mxu2 %v967_v18  ;;  %v2508_v18 = vld [vmem:[#allocation2_spill] sm:$0xff] }
 0x3f0   : > { %1015 = vmatpush.msra.mxu3 %v970_v4  ;;  %731 = vmatpush.msra.mxu0 %v436_v12 }
 0x3f2   : > { %1016 = vmatpush.msra.mxu3 %v968_v32  ;;  %1036 = vmatpush.msrb.mxu0 %v1865_v19  ;;  %v2256_v19 = vld [vmem:[%s2466_s7 + $0x140] sm:$0xff]  ;;  %v2514_v32 = vld [vmem:[#allocation12_spill] sm:$0xff] }
 0x3f3   : > { %854 = vmatpush.msra.mxu1 %v2256_v19 }
 0x3f4   : > { %1037 = vmatpush.msrb.mxu0 %v1887_v35  ;;  %v2264_v35 = vld [vmem:[%s2466_s7 + $0x138] sm:$0xff] }
 0x3f5   : > { %855 = vmatpush.msra.mxu1 %v2264_v35 }
 0x3f6   : > { %1038 = vmatpush.msrb.mxu0 %v1922_v61  ;;  %v2271_v61 = vld [vmem:[%s2466_s7 + $0x130] sm:$0xff] }
 0x3f7   : > { %856 = vmatpush.msra.mxu1 %v2271_v61 }
 0x3f8   : > { %1039 = vmatpush.msrb.mxu0 %v1973_v21  ;;  %v2277_v21 = vld [vmem:[%s2466_s7 + $0x128] sm:$0xff] }
 0x3f9   : > { %857 = vmatpush.msra.mxu1 %v2277_v21 }
 0x3fa   : > { %1040 = vmatpush.msrb.mxu0 %v2011_v28  ;;  %v2283_v28 = vld [vmem:[%s2466_s7 + $0x120] sm:$0xff] }
 0x3fb   : > { %858 = vmatpush.msra.mxu1 %v2283_v28 }
 0x3fc   : > { %1041 = vmatpush.msrb.mxu0 %v2044_v2  ;;  %v2289_v2 = vld [vmem:[%s2466_s7 + $0x118] sm:$0xff] }
 0x3fd   : > { %859 = vmatpush.msra.mxu1 %v2289_v2 }
 0x3fe   : > { %1042 = vmatpush.msrb.mxu0 %v2075_v20 }
 0x3ff   : > { %860 = vmatpush.msra.mxu1 %v2307_v16 }
 0x400   : > { %1043 = vmatpush.msrb.mxu0 %v2105_v6 }
 0x401   : > { %861 = vmatpush.msra.mxu1 %v2312_v53 }
 0x402   : > { %1044 = vmatpush.msrb.mxu0 %v2136_v51 }
 0x403   : > { %862 = vmatpush.msra.mxu1 %v2319_v1 }
 0x404   : > { %1045 = vmatpush.msrb.mxu0 %v2167_v11 }
 0x405   : > { %863 = vmatpush.msra.mxu1 %v2326_v63 }
 0x406   : > { %1046 = vmatpush.msrb.mxu0 %v441_v24  ;;  %v2347_v24 = vld [vmem:[%s2466_s7 + $0xe0] sm:$0xff] }
 0x407   : > { %864 = vmatpush.msra.mxu1 %v2335_v31 }
 0x408   : > { %1047 = vmatpush.msrb.mxu0 %v440_v42  ;;  %v2507_v42 = vld [vmem:[#allocation4_spill] sm:$0xff] }
 0x409   : > { %865 = vmatpush.msra.mxu1 %v2340_v49 }
 0x40a   : > { %1048 = vmatpush.msrb.mxu0 %v439_v13 }
 0x40b   : > { %866 = vmatpush.msra.mxu1 %v2347_v24 }
 0x40c   : > { %1049 = vmatpush.msrb.mxu0 %v438_v34  ;;  %v2513_v34 = vld [vmem:[#allocation7_spill] sm:$0xff] }
 0x40e   : > { %1050 = vmatpush.msrb.mxu0 %v437_v30  ;;  %v2517_v30 = vld [vmem:[#allocation17_spill] sm:$0xff] }
 0x410   : > { %1051 = vmatpush.msrb.mxu0 %v436_v12 }
 0x44f   : > { %v671_v20 = vpop.f32.mrf.mxu2 }
 0x450   : > { %732 = vmatmul.f32.vlgmr.msra.gmra.mxu0 %v671_v20 }
 0x451   : > { %1353 = vmatpush.msk.msra.mxu0 %vm782_vm8, %v2251_v46 }
 0x452   : > { %v697_v6 = vpop.f32.mrf.mxu3 }
 0x453   : > { %1326 = vmatmul.msk.f32.vlgmr.msrb.gmra.mxu1 %vm706_vm9, %v697_v6  ;;  %1162 = vmatpush.msra.mxu0 %v2256_v19 }
 0x454   : > { %1070 = vmatpush.msrb.mxu1 %v1927_v15 }
 0x455   : > { %1163 = vmatpush.msra.mxu0 %v2264_v35 }
 0x456   : > { %1071 = vmatpush.msrb.mxu1 %v2016_v47 }
 0x457   : > { %v674_v51 = vpop.f32.mrf.mxu2  ;;  %1164 = vmatpush.msra.mxu0 %v2271_v61 }
 0x458   : > { %735 = vmatmul.f32.gmra.mxu0 %v674_v51  ;;  %1072 = vmatpush.msrb.mxu1 %v2080_v41 }
 0x459   : > { %1165 = vmatpush.msra.mxu0 %v2277_v21 }
 0x45a   : > { %v700_v45 = vpop.f32.mrf.mxu3  ;;  %1073 = vmatpush.msrb.mxu1 %v2110_v25  ;;  %v2503_v25 = vld [vmem:[#allocation9_spill] sm:$0xff] }
 0x45b   : > { %1327 = vmatmul.msk.f32.gmra.mxu1 %vm706_vm9, %v700_v45  ;;  %1166 = vmatpush.msra.mxu0 %v2283_v28 }
 0x45c   : > { %1074 = vmatpush.msrb.mxu1 %v2141_v5 }
 0x45d   : > { %1167 = vmatpush.msra.mxu0 %v2289_v2 }
 0x45e   : > { %1075 = vmatpush.msrb.mxu1 %v2182_v33 }
 0x45f   : > { %v677_v29 = vpop.f32.mrf.mxu2  ;;  %1168 = vmatpush.msra.mxu0 %v2307_v16 }
 0x460   : > { %738 = vmatmul.f32.gmra.mxu0 %v677_v29  ;;  %1076 = vmatpush.msrb.mxu1 %v2203_v52 }
 0x461   : > { %1169 = vmatpush.msra.mxu0 %v2312_v53 }
 0x462   : > { %v703_v11 = vpop.f32.mrf.mxu3  ;;  %1077 = vmatpush.msrb.mxu1 %v2237_v58 }
 0x463   : > { %1328 = vmatmul.msk.f32.gmra.mxu1 %vm706_vm9, %v703_v11  ;;  %1170 = vmatpush.msra.mxu0 %v2319_v1 }
 0x465   : > { %1171 = vmatpush.msra.mxu0 %v2326_v63 }
 0x467   : > { %1172 = vmatpush.msra.mxu0 %v2335_v31 }
 0x469   : > { %1173 = vmatpush.msra.mxu0 %v2340_v49 }
 0x46b   : > { %1174 = vmatpush.msra.mxu0 %v2347_v24 }
 0x4cd   : > { %v733_v62 = vpop.f32.mrf.mxu0 }
 0x4d0   : > { %v759_v7 = vpop.f32.mrf.mxu1 }
 0x4d1   : > { %v760_v8 = vadd.f32 %v759_v7, %v733_v62 }
 0x4d3   : > { %1333 = vmatmul.msk.f32.vlgmr.msrb.gmra.mxu3 %vm777_vm10, %v760_v8  ;;  %v772_v5 = vrot.slane %v760_v8, 1  ;;  %v839_v33 = vrot.slane %v760_v8, 2 }
 0x4d4   : > { %1350 = vmatpush.msk.msrb.mxu3 %vm782_vm8, %v1820_v48 }
 0x4d5   : > { %v736_v15 = vpop.f32.mrf.mxu0 }
 0x4d6   : > { %1130 = vmatpush.msrb.mxu3 %v1833_v50 }
 0x4d8   : > { %v762_v47 = vpop.f32.mrf.mxu1  ;;  %1131 = vmatpush.msrb.mxu3 %v1851_v10  ;;  %v2505_v10 = vld [vmem:[#allocation3_spill] sm:$0xff] }
 0x4d9   : > { %v763_v41 = vadd.f32 %v762_v47, %v736_v15 }
 0x4da   : > { %1132 = vmatpush.msrb.mxu3 %v2503_v25 }
 0x4db   : > { %v773_v52 = vrot.slane %v763_v41, 1  ;;  %v840_v38 = vrot.slane %v763_v41, 2  ;;  %1334 = vmatmul.msk.f32.gmra.mxu3 %vm777_vm10, %v763_v41 }
 0x4dc   : > { %1133 = vmatpush.msrb.mxu3 %v2504_v59 }
 0x4dd   : > { %v774_v3 = vsel %vm771_vm11, %v772_v5, %v773_v52  ;;  %v841_v48 = vsel %vm318_vm0, %v839_v33, %v840_v38  ;;  %v739_v50 = vpop.f32.mrf.mxu0 }
 0x4de   : > { %1330 = vmatmul.msk.f32.vlgmr.msra.gmra.mxu2 %vm777_vm10, %v774_v3  ;;  %1336 = vmatmul.msk.f32.vlgmr.msra.gmra.mxu1 %vm777_vm10, %v841_v48 }
 0x4df   : > { %1347 = vmatpush.msk.msra.mxu2 %vm782_vm8, %v2505_v10  ;;  %1134 = vmatpush.msrb.mxu3 %v2506_v27 }
 0x4e0   : > { %v765_v14 = vpop.f32.mrf.mxu1  ;;  %1362 = vmatpush.msk.msra.mxu1 %vm782_vm8, %v2251_v46 }
 0x4e1   : > { %v766_v0 = vadd.f32 %v765_v14, %v739_v50  ;;  %1103 = vmatpush.msra.mxu2 %v2507_v42  ;;  %1135 = vmatpush.msrb.mxu3 %v1984_v43  ;;  %v2511_v43 = vld [vmem:[#allocation8_spill] sm:$0xff] }
 0x4e2   : > { %1363 = vmatpush.msra.mxu1 %v2256_v19 }
 0x4e3   : > { %v775_v44 = vrot.slane %v766_v0, 1  ;;  %v842_v55 = vrot.slane %v766_v0, 2  ;;  %1341 = vmatmul.msk.f32.vlgmr.msra.gmra.mxu3 %vm644_vm7, %v2508_v18  ;;  %1104 = vmatpush.msra.mxu2 %v2509_v22 }
 0x4e4   : > { %1136 = vmatpush.msrb.mxu3 %v2021_v56  ;;  %1364 = vmatpush.msra.mxu1 %v2264_v35  ;;  %v2512_v56 = vld [vmem:[#allocation10_spill] sm:$0xff] }
 0x4e5   : > { %v776_v13 = vsel %vm771_vm11, %v773_v52, %v775_v44  ;;  %v843_v4 = vsel %vm318_vm0, %v840_v38, %v842_v55  ;;  %1105 = vmatpush.msra.mxu2 %v2510_v39 }
 0x4e6   : > { %1331 = vmatmul.msk.f32.gmra.mxu2 %vm777_vm10, %v776_v13  ;;  %1337 = vmatmul.msk.f32.gmra.mxu1 %vm777_vm10, %v843_v4 }
 0x4e7   : > { %1137 = vmatpush.msrb.mxu3 %v2049_v17  ;;  %1106 = vmatpush.msra.mxu2 %v2511_v43  ;;  %v2515_v17 = vld [vmem:[#allocation14_spill] sm:$0xff] }
 0x4e8   : > { %1365 = vmatpush.msra.mxu1 %v2271_v61 }
 0x4e9   : > { %1138 = vmatpush.msrb.mxu3 %v2087_v9  ;;  %1107 = vmatpush.msra.mxu2 %v2512_v56  ;;  %v2516_v9 = vld [vmem:[#allocation16_spill] sm:$0xff] }
 0x4ea   : > { %1366 = vmatpush.msra.mxu1 %v2277_v21 }
 0x4eb   : > { %1342 = vmatmul.msk.f32.gmra.mxu3 %vm644_vm7, %v2513_v34  ;;  %1108 = vmatpush.msra.mxu2 %v2514_v32 }
 0x4ec   : > { %1139 = vmatpush.msrb.mxu3 %v2115_v60  ;;  %1367 = vmatpush.msra.mxu1 %v2283_v28  ;;  %v2518_v60 = vld [vmem:[#allocation15_spill] sm:$0xff] }
 0x4ed   : > { %1109 = vmatpush.msra.mxu2 %v2515_v17 }
 0x4ee   : > { %1338 = vmatmul.msk.f32.vlgmr.msrb.gmra.mxu2 %vm644_vm7, %v2508_v18  ;;  %1140 = vmatpush.msrb.mxu3 %v2146_v57 }
 0x4ef   : > { %1110 = vmatpush.msra.mxu2 %v2516_v9  ;;  %1368 = vmatpush.msra.mxu1 %v2289_v2 }
 0x4f0   : > { %1141 = vmatpush.msrb.mxu3 %v2172_v54 }
 0x4f1   : > { %1111 = vmatpush.msra.mxu2 %v2517_v30  ;;  %1369 = vmatpush.msra.mxu1 %v2307_v16 }
 0x4f2   : > { %1142 = vmatpush.msrb.mxu3 %v2194_v40 }
 0x4f3   : > { %1343 = vmatmul.msk.f32.gmra.mxu3 %vm644_vm7, %v2518_v60  ;;  %1112 = vmatpush.msra.mxu2 %v2054_v36 }
 0x4f4   : > { %1370 = vmatpush.msra.mxu1 %v2312_v53 }
 0x4f5   : > { %1113 = vmatpush.msra.mxu2 %v2092_v23 }
 0x4f6   : > { %1339 = vmatmul.msk.f32.gmra.mxu2 %vm644_vm7, %v2513_v34  ;;  %1371 = vmatpush.msra.mxu1 %v2319_v1 }
 0x4f7   : > { %1114 = vmatpush.msra.mxu2 %v2120_v37 }
 0x4f8   : > { %1372 = vmatpush.msra.mxu1 %v2326_v63 }
 0x4f9   : > { %1115 = vmatpush.msra.mxu2 %v2151_v26 }
 0x4fa   : > { %1373 = vmatpush.msra.mxu1 %v2335_v31 }
 0x4fc   : > { %1374 = vmatpush.msra.mxu1 %v2340_v49 }
 0x4fe   : > { %1340 = vmatmul.msk.f32.gmra.mxu2 %vm644_vm7, %v2518_v60  ;;  %1375 = vmatpush.msra.mxu1 %v2347_v24 }
 0x556   : > { %v833_v36 = vpop.f32.mrf.mxu3 }
 0x55b   : > { %v868_v57 = vpop.f32.mrf.mxu1 }
 0x55e   : > { %v836_v23 = vpop.f32.mrf.mxu3 }
 0x561   : > { %v803_v54 = vpop.f32.mrf.mxu2 }
 0x562   : > { %v834_v40 = vadd.f32 %v833_v36, %v803_v54 }
 0x563   : > { %v871_v46 = vpop.f32.mrf.mxu1 }
 0x564   : > { %v874_v37 = vadd.f32 %v868_v57, %v834_v40 }
 0x566   : > { %877 = vst.msk [vmem:[%s2433_s24] sm:$0xff] %vm876_vm12, %v874_v37  ;;  %v1018_v26 = vpop.f32.mrf.mxu3 }
 0x567   : > { %1344 = vmatmul.msk.f32.vlgmr.msrb.gmra.mxu1 %vm706_vm9, %v1018_v26 }
 0x569   : > { %v806_v12 = vpop.f32.mrf.mxu2 }
 0x56a   : > { %v837_v58 = vadd.f32 %v836_v23, %v806_v12 }
 0x56c   : > { %v875_v19 = vadd.f32 %v871_v46, %v837_v58 }
 0x56e   : > { %878 = vst.msk [vmem:[%s2433_s24 + $0x8] sm:$0xff] %vm876_vm12, %v875_v19  ;;  %v1021_v35 = vpop.f32.mrf.mxu3 }
 0x56f   : > { %1345 = vmatmul.msk.f32.gmra.mxu1 %vm706_vm9, %v1021_v35 }
 0x571   : > { %v992_v61 = vpop.f32.mrf.mxu2 }
 0x572   : > { %1052 = vmatmul.f32.vlgmr.msrb.gmra.mxu0 %v992_v61 }
 0x576   : > { %v1024_v21 = vpop.f32.mrf.mxu3 }
 0x577   : > { %1346 = vmatmul.msk.f32.gmra.mxu1 %vm706_vm9, %v1024_v21 }
 0x579   : > { %v995_v28 = vpop.f32.mrf.mxu2 }
 0x57a   : > { %1055 = vmatmul.f32.gmra.mxu0 %v995_v28 }
 0x581   : > { %v998_v2 = vpop.f32.mrf.mxu2 }
 0x582   : > { %1058 = vmatmul.f32.gmra.mxu0 %v998_v2 }
 0x5e4   : > { %v1079_v20 = vpop.f32.mrf.mxu1 }
 0x5ec   : > { %v1082_v45 = vpop.f32.mrf.mxu1 }
 0x5ef   : > { %v1053_v6 = vpop.f32.mrf.mxu0 }
 0x5f0   : > { %v1080_v51 = vadd.f32 %v1079_v20, %v1053_v6 }
 0x5f2   : > { %1351 = vmatmul.msk.f32.vlgmr.msrb.gmra.mxu3 %vm777_vm10, %v1080_v51  ;;  %v1091_v16 = vrot.slane %v1080_v51, 1  ;;  %v1150_v53 = vrot.slane %v1080_v51, 2 }
 0x5f4   : > { %v1085_v24 = vpop.f32.mrf.mxu1 }
 0x5f7   : > { %v1056_v29 = vpop.f32.mrf.mxu0 }
 0x5f8   : > { %v1083_v11 = vadd.f32 %v1082_v45, %v1056_v29 }
 0x5fa   : > { %v1092_v1 = vrot.slane %v1083_v11, 1  ;;  %v1151_v63 = vrot.slane %v1083_v11, 2  ;;  %1352 = vmatmul.msk.f32.gmra.mxu3 %vm777_vm10, %v1083_v11 }
 0x5fc   : > { %v1093_v31 = vsel %vm771_vm11, %v1091_v16, %v1092_v1  ;;  %v1152_v49 = vsel %vm318_vm0, %v1150_v53, %v1151_v63 }
 0x5fd   : > { %1348 = vmatmul.msk.f32.vlgmr.msra.gmra.mxu2 %vm777_vm10, %v1093_v31  ;;  %1354 = vmatmul.msk.f32.vlgmr.msra.gmra.mxu0 %vm777_vm10, %v1152_v49 }
 0x5ff   : > { %v1059_v62 = vpop.f32.mrf.mxu0 }
 0x600   : > { %v1086_v7 = vadd.f32 %v1085_v24, %v1059_v62 }
 0x602   : > { %v1094_v8 = vrot.slane %v1086_v7, 1  ;;  %v1153_v15 = vrot.slane %v1086_v7, 2 }
 0x604   : > { %v1095_v47 = vsel %vm771_vm11, %v1092_v1, %v1094_v8  ;;  %v1154_v41 = vsel %vm318_vm0, %v1151_v63, %v1153_v15 }
 0x605   : > { %1349 = vmatmul.msk.f32.gmra.mxu2 %vm777_vm10, %v1095_v47  ;;  %1355 = vmatmul.msk.f32.vlgmr.msra.gmra.mxu1 %vm777_vm10, %v1154_v41 }
 0x675   : > { %v1144_v25 = vpop.f32.mrf.mxu3 }
 0x67a   : > { %v1176_v52 = vpop.f32.mrf.mxu0 }
 0x67d   : > { %v1147_v59 = vpop.f32.mrf.mxu3 }
 0x680   : > { %v1117_v5 = vpop.f32.mrf.mxu2 }
 0x681   : > { %v1145_v33 = vadd.f32 %v1144_v25, %v1117_v5 }
 0x682   : > { %v1179_v50 = vpop.f32.mrf.mxu1 }
 0x683   : > { %v1182_v38 = vadd.f32 %v1176_v52, %v1145_v33 }
 0x685   : > { %1356 = vst.msk [vmem:[%s2433_s24 + $0x10] sm:$0xff] %vm876_vm12, %v1182_v38 }
 0x688   : > { %v1120_v3 = vpop.f32.mrf.mxu2 }
 0x689   : > { %v1148_v48 = vadd.f32 %v1147_v59, %v1120_v3 }
 0x68b   : > { %v1183_v10 = vadd.f32 %v1179_v50, %v1148_v48 }
 0x68d   : > { %1357 = vst.msk [vmem:[%s2433_s24 + $0x18] sm:$0xff] %vm876_vm12, %v1183_v10 }
 0x68e PF: > { %s18_s27 = sadd.s32 1, %s1425_s27  }
 0x68f   : > { %p15_p4 = scmp.ge.s32.totalorder %s18_s27, 4  }
 0x691   :  { %17 = sbr.rel (!%p15_p4) target bundleno = 1 (0x1), region = 89 }

</bundles_post_ra>
